<compile_context>
chip_gen: v7x
topology: tpu7x:2x2x1
jax: 0.10.0
libtpu: 0.0.40
codegen_flags: <defaults>
</compile_context>

<pallas_src>
import jax
import jax.numpy as jnp
from jax.experimental import pallas as pl
from jax.experimental.pallas import tpu as pltpu

HIDDEN_LAYER = 256
EMBED_DIM = 8
TB_MAX = 1024                      # batch-tile cap (was 256)


def _round_up(x, m):
    return ((x + m - 1) // m) * m


def _cdiv(a, b):
    return (a + b - 1) // b


# ---------------------------------------------------------------------------
# Pallas kernel: fused twin FCFF heads.
#   x:   (TB, K_pad)      bf16   (concat of obs/act pieces, zero-padded K)
#   w1:  (K_pad, 2H) bf16, b1: (1, 2H) f32       (heads fused on output axis)
#   w2a/w2b: (H, H)  bf16, b2a/b2b: (1, H) f32
#   w3:  (2, H) f32 (row 0 = head-1 proj, row 1 = head-2 proj), b3: (1, 2) f32
#   out: (TB, 2) f32  -> column 0 = q1, column 1 = q2
# ---------------------------------------------------------------------------
def _qnet_kernel(
    x_ref,
    w1_ref, b1_ref,
    w2a_ref, b2a_ref,
    w2b_ref, b2b_ref,
    w3_ref, b3_ref,
    out_ref,
):
    H = w2a_ref.shape[0]

    # Layer 1: one fused matmul for both heads (K_pad x 2H), f32 accumulate.
    h1 = jnp.dot(x_ref[...], w1_ref[...], preferred_element_type=jnp.float32)
    h1 = jnp.maximum(h1 + b1_ref[...], 0.0)            # f32, (TB, 2H)

    # Split per head (lane-aligned at H=256) and cast to bf16 for the MXU.
    h1a = h1[:, :H].astype(jnp.bfloat16)
    h1b = h1[:, H:].astype(jnp.bfloat16)

    # Layer 2: two clean HxH (256x256) matmuls, f32 bias/ReLU.
    h2a = jnp.dot(h1a, w2a_ref[...], preferred_element_type=jnp.float32)
    h2a = jnp.maximum(h2a + b2a_ref[...], 0.0)
    h2b = jnp.dot(h1b, w2b_ref[...], preferred_element_type=jnp.float32)
    h2b = jnp.maximum(h2b + b2b_ref[...], 0.0)

    # Layer 3: N=1 projection per head as a VPU multiply + XLU lane-reduce
    # (keeps the MXU free; a Mx256x1 matmul would waste >99% of its lanes).
    w3 = w3_ref[...]                                    # (2, H) f32
    q1 = jnp.sum(h2a * w3[0:1, :], axis=-1, keepdims=True)
    q2 = jnp.sum(h2b * w3[1:2, :], axis=-1, keepdims=True)

    # Write the two columns directly (no width-1 lane concatenate).
    out_ref[:, 0:1] = q1 + b3_ref[:, 0:1]
    out_ref[:, 1:2] = q2 + b3_ref[:, 1:2]


def _choose_tiling(B):
    """Pick (tb, b_pad, n_tiles): tb a multiple of 16, tb <= TB_MAX,
    >= 2 (even) grid steps whenever B > 16, small bounded batch padding."""
    b16 = _round_up(max(B, 16), 16)
    if b16 <= 16:
        return b16, b16, 1
    n_tiles = max(2, _cdiv(b16, TB_MAX))
    n_tiles = _round_up(n_tiles, 2)          # even -> clean 2-way v7x split
    tb = _round_up(_cdiv(b16, n_tiles), 16)  # tb <= TB_MAX by construction
    return tb, tb * n_tiles, n_tiles


def _fcff_heads_pallas(x_bf16, iparams, tb):
    """x_bf16: (B_pad, K_pad) bf16, B_pad % tb == 0. Returns (B_pad, 2) f32."""
    b_pad, k_pad = x_bf16.shape
    grid = (b_pad // tb,)

    weights = (
        iparams["w1"], iparams["b1"],
        iparams["w2a"], iparams["b2a"],
        iparams["w2b"], iparams["b2b"],
        iparams["w3"], iparams["b3"],
    )
    # Weights use a constant index_map -> stay resident in VMEM across the
    # batch grid; x / out are tiled along batch and pipelined.
    weight_specs = [pl.BlockSpec(w.shape, lambda i: (0, 0)) for w in weights]

    out = pl.pallas_call(
        _qnet_kernel,
        out_shape=jax.ShapeDtypeStruct((b_pad, 2), jnp.float32),
        grid=grid,
        in_specs=[pl.BlockSpec((tb, k_pad), lambda i: (i, 0))] + weight_specs,
        out_specs=pl.BlockSpec((tb, 2), lambda i: (i, 0)),
        compiler_params=pltpu.CompilerParams(
            dimension_semantics=("parallel",),
            # 32 MiB: raises v5e's 16 MiB default so tb=1024 f32 intermediates
            # fit; equal to the v6e/v7x default (no effect there).
            vmem_limit_bytes=32 * 1024 * 1024,
        ),
    )(x_bf16, *weights)
    return out


# ---------------------------------------------------------------------------
# Parameter construction (Xavier-uniform weights / zero biases, matching
# weights_init_ in the PyTorch module; embeddings ~ N(0, 1) like nn.Embedding).
# ---------------------------------------------------------------------------
def _xavier_uniform(key, fan_in, fan_out):
    limit = jnp.sqrt(6.0 / (fan_in + fan_out))
    return jax.random.uniform(
        key, (fan_in, fan_out), dtype=jnp.float32, minval=-limit, maxval=limit
    )


def make_fcff_params(key, dim_in, dim_out, hidden=HIDDEN_LAYER):
    k1, k2, k3 = jax.random.split(key, 3)
    w1 = _xavier_uniform(k1, dim_in, hidden)
    b1 = jnp.zeros((1, hidden), jnp.float32)
    w2 = _xavier_uniform(k2, hidden, hidden)
    b2 = jnp.zeros((1, hidden), jnp.float32)
    w3 = _xavier_uniform(k3, hidden, dim_out)
    b3 = jnp.zeros((1, dim_out), jnp.float32)
    return (w1, b1, w2, b2, w3, b3)


def make_qnetwork_params(key, dim_obs, nvec, dim_c, embed_dim=EMBED_DIM):
    dim_d = len(nvec)
    dim_act = dim_d * embed_dim + dim_c
    keys = jax.random.split(key, dim_d + 2)
    embeds = [
        jax.random.normal(keys[i], (int(nvec[i]), embed_dim), dtype=jnp.float32)
        for i in range(dim_d)
    ]
    p1 = make_fcff_params(keys[dim_d], dim_obs + dim_act, 1)
    p2 = make_fcff_params(keys[dim_d + 1], dim_obs + dim_act, 1)
    return {"embeds": embeds, "layers1": p1, "layers2": p2}


def prepare_inference_params(params):
    """One-time: fuse the twin heads, pad K to a 128 multiple, cast to bf16."""
    w1a, b1a, w2a, b2a, w3a, b3a = params["layers1"]
    w1b, b1b, w2b, b2b, w3b, b3b = params["layers2"]
    d_in = w1a.shape[0]
    k_pad = _round_up(d_in, 128)

    w1 = jnp.concatenate([w1a, w1b], axis=1)                  # (d_in, 2H)
    w1 = jnp.pad(w1, ((0, k_pad - d_in), (0, 0)))             # (k_pad, 2H)
    b1 = jnp.concatenate([b1a, b1b], axis=1)                  # (1, 2H)
    w3 = jnp.concatenate([w3a, w3b], axis=1).T                # (2, H)
    b3 = jnp.concatenate([b3a, b3b], axis=1)                  # (1, 2)

    return {
        "embeds": params["embeds"],
        "d_in": d_in,
        "w1": w1.astype(jnp.bfloat16),
        "b1": b1.astype(jnp.float32),
        "w2a": w2a.astype(jnp.bfloat16), "b2a": b2a.astype(jnp.float32),
        "w2b": w2b.astype(jnp.bfloat16), "b2b": b2b.astype(jnp.float32),
        "w3": w3.astype(jnp.float32),
        "b3": b3.astype(jnp.float32),
    }


# ---------------------------------------------------------------------------
# QNetwork forward (glue in plain JAX, hot path in Pallas).
# ---------------------------------------------------------------------------
def encode_discrete(embeds, a_d):
    """a_d: [B, dim_d] int32 -> [B, dim_d * embed_dim] float32."""
    embedded = [jnp.take(embeds[i], a_d[:, i], axis=0) for i in range(len(embeds))]
    return jnp.concatenate(embedded, axis=-1)


@jax.jit
def qnetwork_forward(iparams, obs_self, obs_tank, obs_poly, obs_bullet, act_d, act_c):
    act_d_emb = encode_discrete(iparams["embeds"], act_d)
    pieces = [obs_self, obs_tank, obs_poly, obs_bullet, act_d_emb, act_c]

    B = obs_self.shape[0]
    d_cat = sum(int(p.shape[-1]) for p in pieces)
    k_pad = iparams["w1"].shape[0]
    tb, b_pad, _ = _choose_tiling(B)

    # Single packing op: cast each piece to bf16, pad its batch rows, and make
    # the K zero-pad another concat operand -> one (b_pad, k_pad) bf16 slab
    # written to HBM (no separate f32 concat + padded bf16 copy round-trip).
    pad_rows = b_pad - B
    packed = [
        jnp.pad(p.astype(jnp.bfloat16), ((0, pad_rows), (0, 0))) for p in pieces
    ]
    if k_pad > d_cat:
        packed.append(jnp.zeros((b_pad, k_pad - d_cat), jnp.bfloat16))
    x = jnp.concatenate(packed, axis=-1)                  # (b_pad, k_pad) bf16

    q = _fcff_heads_pallas(x, iparams, tb)[:B]            # padded rows sliced off
    return q[:, 0:1], q[:, 1:2]


# ---------------------------------------------------------------------------
# References for correctness checking.
# ---------------------------------------------------------------------------
def _ref_forward_f32(params, obs_self, obs_tank, obs_poly, obs_bullet, act_d, act_c):
    """Pure f32 reference (matches the PyTorch module math)."""
    act_d_emb = encode_discrete(params["embeds"], act_d)
    x = jnp.concatenate(
        [obs_self, obs_tank, obs_poly, obs_bullet, act_d_emb, act_c], axis=-1
    ).astype(jnp.float32)

    def head(p):
        w1, b1, w2, b2, w3, b3 = p
        h = jnp.maximum(x @ w1 + b1, 0.0)
        h = jnp.maximum(h @ w2 + b2, 0.0)
        return h @ w3 + b3

    return head(params["layers1"]), head(params["layers2"])


def _ref_forward_bf16(params, obs_self, obs_tank, obs_poly, obs_bullet, act_d, act_c):
    """Mirror of the kernel's numerics: bf16 matmul inputs, f32 accumulate."""
    act_d_emb = encode_discrete(params["embeds"], act_d)
    x = jnp.concatenate(
        [obs_self, obs_tank, obs_poly, obs_bullet, act_d_emb, act_c], axis=-1
    ).astype(jnp.bfloat16)

    def head(p):
        w1, b1, w2, b2, w3, b3 = p
        h = jnp.dot(x, w1.astype(jnp.bfloat16),
                    preferred_element_type=jnp.float32) + b1
        h = jnp.maximum(h, 0.0).astype(jnp.bfloat16)
        h = jnp.dot(h, w2.astype(jnp.bfloat16),
                    preferred_element_type=jnp.float32) + b2
        h = jnp.maximum(h, 0.0)
        # Layer 3 mirrored as an f32 elementwise multiply + reduce.
        return jnp.sum(h * w3[:, 0][None, :], axis=-1, keepdims=True) + b3

    return head(params["layers1"]), head(params["layers2"])


# ---------------------------------------------------------------------------
# Demo / self-test.
# ---------------------------------------------------------------------------
def _make_inputs(key, B, dims, nvec, dim_c):
    d_self, d_tank, d_poly, d_bullet = dims
    k1, k2, k3, k4, k5, k6 = jax.random.split(key, 6)
    obs_self = jax.random.normal(k1, (B, d_self), dtype=jnp.float32)
    obs_tank = jax.random.normal(k2, (B, d_tank), dtype=jnp.float32)      # te(...) output
    obs_poly = jax.random.normal(k3, (B, d_poly), dtype=jnp.float32)      # pe(...) output
    obs_bullet = jax.random.normal(k4, (B, d_bullet), dtype=jnp.float32)  # be(...) output
    act_d = jnp.stack(
        [jax.random.randint(jax.random.fold_in(k5, i), (B,), 0, n)
         for i, n in enumerate(nvec)],
        axis=-1,
    ).astype(jnp.int32)
    act_c = jax.random.normal(k6, (B, dim_c), dtype=jnp.float32)
    return obs_self, obs_tank, obs_poly, obs_bullet, act_d, act_c


if __name__ == "__main__":
    key = jax.random.PRNGKey(0)

    # Small, self-consistent shapes.
    dims = (8, 16, 16, 16)                               # self / tank / poly / bullet
    dim_obs = sum(dims)                                  # 56
    nvec = [3, 4, 5]                                     # discrete action arity
    dim_c = 4                                            # continuous action dim

    kp, kin1, kin2 = jax.random.split(key, 3)
    params = make_qnetwork_params(kp, dim_obs, nvec, dim_c)
    iparams = prepare_inference_params(params)

    def check(B, kin):
        inputs = _make_inputs(kin, B, dims, nvec, dim_c)
        q1, q2 = qnetwork_forward(iparams, *inputs)
        jax.block_until_ready((q1, q2))
        assert q1.shape == (B, 1) and q2.shape == (B, 1)

        # Tight check against the numerics-mirrored (bf16-matmul) reference.
        m1, m2 = _ref_forward_bf16(params, *inputs)
        assert jnp.allclose(q1, m1, atol=2e-3, rtol=2e-3)
        assert jnp.allclose(q2, m2, atol=2e-3, rtol=2e-3)

        # Loose sanity check against the full-f32 reference (bf16 weight error).
        r1, r2 = _ref_forward_f32(params, *inputs)
        assert jnp.allclose(q1, r1, atol=1e-1, rtol=1e-1)
        assert jnp.allclose(q2, r2, atol=1e-1, rtol=1e-1)

    # Single-tile path (tiny batch) and multi-tile path (2 grid steps).
    check(2, kin1)
    check(40, kin2)

    print("KERNEL_OK")
</pallas_src>

<mosaic_0001>
module attributes {stable_mosaic.version = 11 : i64} {
  func.func @_qnet_kernel(%arg0: i32, %arg1: memref<16x128xbf16, #tpu.memory_space<vmem>>, %arg2: memref<128x512xbf16, #tpu.memory_space<vmem>>, %arg3: memref<1x512xf32, #tpu.memory_space<vmem>>, %arg4: memref<256x256xbf16, #tpu.memory_space<vmem>>, %arg5: memref<1x256xf32, #tpu.memory_space<vmem>>, %arg6: memref<256x256xbf16, #tpu.memory_space<vmem>>, %arg7: memref<1x256xf32, #tpu.memory_space<vmem>>, %arg8: memref<2x256xf32, #tpu.memory_space<vmem>>, %arg9: memref<1x2xf32, #tpu.memory_space<vmem>>, %arg10: memref<16x2xf32, #tpu.memory_space<vmem>>) attributes {dimension_semantics = [#tpu.dimension_semantics<parallel>], iteration_bounds = array<i64: 1>, scalar_prefetch = 0 : i64, scratch_operands = 0 : i64, tpu.core_type = #tpu.core_type<tc>, window_params = [{transform_indices = @transform_0, window_bounds = array<i64: 16, 128>}, {pipeline_mode = #tpu.pipeline_mode<synchronous>, transform_indices = @transform_1, window_bounds = array<i64: 128, 512>}, {pipeline_mode = #tpu.pipeline_mode<synchronous>, transform_indices = @transform_2, window_bounds = array<i64: 1, 512>}, {pipeline_mode = #tpu.pipeline_mode<synchronous>, transform_indices = @transform_3, window_bounds = array<i64: 256, 256>}, {pipeline_mode = #tpu.pipeline_mode<synchronous>, transform_indices = @transform_4, window_bounds = array<i64: 1, 256>}, {pipeline_mode = #tpu.pipeline_mode<synchronous>, transform_indices = @transform_5, window_bounds = array<i64: 256, 256>}, {pipeline_mode = #tpu.pipeline_mode<synchronous>, transform_indices = @transform_6, window_bounds = array<i64: 1, 256>}, {pipeline_mode = #tpu.pipeline_mode<synchronous>, transform_indices = @transform_7, window_bounds = array<i64: 2, 256>}, {pipeline_mode = #tpu.pipeline_mode<synchronous>, transform_indices = @transform_8, window_bounds = array<i64: 1, 2>}, {transform_indices = @transform_9, window_bounds = array<i64: 16, 2>}]} {
    %c0 = arith.constant 0 : index
    %c0_0 = arith.constant 0 : index
    %0 = vector.load %arg1[%c0, %c0_0] : memref<16x128xbf16, #tpu.memory_space<vmem>>, vector<16x128xbf16>
    %c0_1 = arith.constant 0 : index
    %c0_2 = arith.constant 0 : index
    %1 = vector.load %arg2[%c0_1, %c0_2] : memref<128x512xbf16, #tpu.memory_space<vmem>>, vector<128x512xbf16>
    %cst = arith.constant dense<0.000000e+00> : vector<16x512xf32>
    %2 = tpu.matmul %0, %1, %cst {dimension_numbers = #tpu.dot_dimension_numbers<[1], [0], [0], [1], [0, 0, 1, 1], [], []>} : vector<16x128xbf16>, vector<128x512xbf16>, vector<16x512xf32> -> vector<16x512xf32>
    %c0_3 = arith.constant 0 : index
    %c0_4 = arith.constant 0 : index
    %3 = vector.load %arg3[%c0_3, %c0_4] : memref<1x512xf32, #tpu.memory_space<vmem>>, vector<1x512xf32>
    %4 = vector.broadcast %3 : vector<1x512xf32> to vector<16x512xf32>
    %5 = arith.addf %2, %4 : vector<16x512xf32>
    %cst_5 = arith.constant 0.000000e+00 : f32
    %6 = vector.broadcast %cst_5 : f32 to vector<16x512xf32>
    %7 = arith.maximumf %5, %6 : vector<16x512xf32>
    %8 = vector.extract_strided_slice %7 {offsets = [0, 0], sizes = [16, 256], strides = [1, 1]} : vector<16x512xf32> to vector<16x256xf32>
    %9 = arith.truncf %8 : vector<16x256xf32> to vector<16x256xbf16>
    %10 = vector.extract_strided_slice %7 {offsets = [0, 256], sizes = [16, 256], strides = [1, 1]} : vector<16x512xf32> to vector<16x256xf32>
    %11 = arith.truncf %10 : vector<16x256xf32> to vector<16x256xbf16>
    %c0_6 = arith.constant 0 : index
    %c0_7 = arith.constant 0 : index
    %12 = vector.load %arg4[%c0_6, %c0_7] : memref<256x256xbf16, #tpu.memory_space<vmem>>, vector<256x256xbf16>
    %cst_8 = arith.constant dense<0.000000e+00> : vector<16x256xf32>
    %13 = tpu.matmul %9, %12, %cst_8 {dimension_numbers = #tpu.dot_dimension_numbers<[1], [0], [0], [1], [0, 0, 1, 1], [], []>} : vector<16x256xbf16>, vector<256x256xbf16>, vector<16x256xf32> -> vector<16x256xf32>
    %c0_9 = arith.constant 0 : index
    %c0_10 = arith.constant 0 : index
    %14 = vector.load %arg5[%c0_9, %c0_10] : memref<1x256xf32, #tpu.memory_space<vmem>>, vector<1x256xf32>
    %15 = vector.broadcast %14 : vector<1x256xf32> to vector<16x256xf32>
    %16 = arith.addf %13, %15 : vector<16x256xf32>
    %cst_11 = arith.constant 0.000000e+00 : f32
    %17 = vector.broadcast %cst_11 : f32 to vector<16x256xf32>
    %18 = arith.maximumf %16, %17 : vector<16x256xf32>
    %c0_12 = arith.constant 0 : index
    %c0_13 = arith.constant 0 : index
    %19 = vector.load %arg6[%c0_12, %c0_13] : memref<256x256xbf16, #tpu.memory_space<vmem>>, vector<256x256xbf16>
    %cst_14 = arith.constant dense<0.000000e+00> : vector<16x256xf32>
    %20 = tpu.matmul %11, %19, %cst_14 {dimension_numbers = #tpu.dot_dimension_numbers<[1], [0], [0], [1], [0, 0, 1, 1], [], []>} : vector<16x256xbf16>, vector<256x256xbf16>, vector<16x256xf32> -> vector<16x256xf32>
    %c0_15 = arith.constant 0 : index
    %c0_16 = arith.constant 0 : index
    %21 = vector.load %arg7[%c0_15, %c0_16] : memref<1x256xf32, #tpu.memory_space<vmem>>, vector<1x256xf32>
    %22 = vector.broadcast %21 : vector<1x256xf32> to vector<16x256xf32>
    %23 = arith.addf %20, %22 : vector<16x256xf32>
    %cst_17 = arith.constant 0.000000e+00 : f32
    %24 = vector.broadcast %cst_17 : f32 to vector<16x256xf32>
    %25 = arith.maximumf %23, %24 : vector<16x256xf32>
    %c0_18 = arith.constant 0 : index
    %c0_19 = arith.constant 0 : index
    %26 = vector.load %arg8[%c0_18, %c0_19] : memref<2x256xf32, #tpu.memory_space<vmem>>, vector<2x256xf32>
    %27 = vector.extract_strided_slice %26 {offsets = [0, 0], sizes = [1, 256], strides = [1, 1]} : vector<2x256xf32> to vector<1x256xf32>
    %28 = vector.broadcast %27 : vector<1x256xf32> to vector<16x256xf32>
    %29 = arith.mulf %18, %28 : vector<16x256xf32>
    %cst_20 = arith.constant dense<0.000000e+00> : vector<16xf32>
    %30 = vector.multi_reduction <add>, %29, %cst_20 [1] : vector<16x256xf32> to vector<16xf32>
    %31 = vector.shape_cast %30 : vector<16xf32> to vector<16x1xf32>
    %32 = vector.extract_strided_slice %26 {offsets = [1, 0], sizes = [1, 256], strides = [1, 1]} : vector<2x256xf32> to vector<1x256xf32>
    %33 = vector.broadcast %32 : vector<1x256xf32> to vector<16x256xf32>
    %34 = arith.mulf %25, %33 : vector<16x256xf32>
    %cst_21 = arith.constant dense<0.000000e+00> : vector<16xf32>
    %35 = vector.multi_reduction <add>, %34, %cst_21 [1] : vector<16x256xf32> to vector<16xf32>
    %36 = vector.shape_cast %35 : vector<16xf32> to vector<16x1xf32>
    %c0_22 = arith.constant 0 : index
    %c0_23 = arith.constant 0 : index
    %37 = vector.load %arg9[%c0_22, %c0_23] : memref<1x2xf32, #tpu.memory_space<vmem>>, vector<1x1xf32>
    %38 = vector.broadcast %37 : vector<1x1xf32> to vector<16x1xf32>
    %39 = arith.addf %31, %38 : vector<16x1xf32>
    %c0_24 = arith.constant 0 : index
    %c0_25 = arith.constant 0 : index
    %40 = vector.load %arg10[%c0_24, %c0_25] : memref<16x2xf32, #tpu.memory_space<vmem>>, vector<16x1xf32>
    tpu.vector_store %arg10[%c0_24, %c0_25], %39 {strides = array<i32>} : memref<16x2xf32, #tpu.memory_space<vmem>>, vector<16x1xf32>,
    %c0_26 = arith.constant 0 : index
    %c1 = arith.constant 1 : index
    %41 = vector.load %arg9[%c0_26, %c1] : memref<1x2xf32, #tpu.memory_space<vmem>>, vector<1x1xf32>
    %42 = vector.broadcast %41 : vector<1x1xf32> to vector<16x1xf32>
    %43 = arith.addf %36, %42 : vector<16x1xf32>
    %c0_27 = arith.constant 0 : index
    %c1_28 = arith.constant 1 : index
    %44 = vector.load %arg10[%c0_27, %c1_28] : memref<16x2xf32, #tpu.memory_space<vmem>>, vector<16x1xf32>
    tpu.vector_store %arg10[%c0_27, %c1_28], %43 {strides = array<i32>} : memref<16x2xf32, #tpu.memory_space<vmem>>, vector<16x1xf32>,
    return
  }
  func.func @transform_0(%arg0: i32) -> (i32, i32) {
    %c0_i32 = arith.constant 0 : i32
    %c0_i32_0 = arith.constant 0 : i32
    return %arg0, %c0_i32 : i32, i32
  }
  func.func @transform_1(%arg0: i32) -> (i32, i32) {
    %c0_i32 = arith.constant 0 : i32
    %c0_i32_0 = arith.constant 0 : i32
    %c0_i32_1 = arith.constant 0 : i32
    return %c0_i32, %c0_i32_0 : i32, i32
  }
  func.func @transform_2(%arg0: i32) -> (i32, i32) {
    %c0_i32 = arith.constant 0 : i32
    %c0_i32_0 = arith.constant 0 : i32
    %c0_i32_1 = arith.constant 0 : i32
    return %c0_i32, %c0_i32_0 : i32, i32
  }
  func.func @transform_3(%arg0: i32) -> (i32, i32) {
    %c0_i32 = arith.constant 0 : i32
    %c0_i32_0 = arith.constant 0 : i32
    %c0_i32_1 = arith.constant 0 : i32
    return %c0_i32, %c0_i32_0 : i32, i32
  }
  func.func @transform_4(%arg0: i32) -> (i32, i32) {
    %c0_i32 = arith.constant 0 : i32
    %c0_i32_0 = arith.constant 0 : i32
    %c0_i32_1 = arith.constant 0 : i32
    return %c0_i32, %c0_i32_0 : i32, i32
  }
  func.func @transform_5(%arg0: i32) -> (i32, i32) {
    %c0_i32 = arith.constant 0 : i32
    %c0_i32_0 = arith.constant 0 : i32
    %c0_i32_1 = arith.constant 0 : i32
    return %c0_i32, %c0_i32_0 : i32, i32
  }
  func.func @transform_6(%arg0: i32) -> (i32, i32) {
    %c0_i32 = arith.constant 0 : i32
    %c0_i32_0 = arith.constant 0 : i32
    %c0_i32_1 = arith.constant 0 : i32
    return %c0_i32, %c0_i32_0 : i32, i32
  }
  func.func @transform_7(%arg0: i32) -> (i32, i32) {
    %c0_i32 = arith.constant 0 : i32
    %c0_i32_0 = arith.constant 0 : i32
    %c0_i32_1 = arith.constant 0 : i32
    return %c0_i32, %c0_i32_0 : i32, i32
  }
  func.func @transform_8(%arg0: i32) -> (i32, i32) {
    %c0_i32 = arith.constant 0 : i32
    %c0_i32_0 = arith.constant 0 : i32
    %c0_i32_1 = arith.constant 0 : i32
    return %c0_i32, %c0_i32_0 : i32, i32
  }
  func.func @transform_9(%arg0: i32) -> (i32, i32) {
    %c0_i32 = arith.constant 0 : i32
    %c0_i32_0 = arith.constant 0 : i32
    return %arg0, %c0_i32 : i32, i32
  }
}

</mosaic_0001>

<bundles_post_ra>
// kernel: qnetwork_forward.1
= control target key start
LH: loop header
LB: loop body
LE: loop exit
PB: predicated region body
PF: predicated region fallthrough
CT: control target
= control target key end

     0   :  { %14 = vsyncpa [#allocation3], 0  ;;  %s1481_s0 = inlined_call_operand.vmem [shape: bf16[16,128], index: 0, kind: input, shape index: {}]   ;;  %s1482_s1 = inlined_call_operand.vmem [shape: bf16[128,512], index: 1, kind: input, shape index: {}]   ;;  %s1483_s2 = inlined_call_operand.vmem [shape: f32[1,512], index: 2, kind: input, shape index: {}]   ;;  %s1484_s3 = inlined_call_operand.hbm [shape: bf16[256,256], index: 3, kind: input, shape index: {}]   ;;  %s1485_s4 = inlined_call_operand.vmem [shape: f32[1,256], index: 4, kind: input, shape index: {}]   ;;  %s1486_s5 = inlined_call_operand.hbm [shape: bf16[256,256], index: 5, kind: input, shape index: {}]   ;;  %s1487_s6 = inlined_call_operand.vmem [shape: f32[1,256], index: 6, kind: input, shape index: {}]   ;;  %s1488_s7 = inlined_call_operand.vmem [shape: f32[2,256], index: 7, kind: input, shape index: {}]   ;;  %s1489_s8 = inlined_call_operand.vmem [shape: f32[1,2], index: 8, kind: input, shape index: {}]   ;;  %s1490_s9 = inlined_call_operand.vmem [shape: f32[16,2], index: 9, kind: output, shape index: {}]  }
   0x1   :  { %15 = vsyncpa [#allocation5], 0  ;;  %s1268_s30 = smov [#allocation2]   ;;  %s1220_s13 = scalar_lea.hbm %s1484_s3, 4096 }
   0x2   :  { %s27_s10 = sshll.u32 %s1268_s30, 4  ;;  %p1221_p0 = scmp.ne.s32.totalorder %s1484_s3, %s1220_s13  ;;  %s28_s10 = int_to_ptr.vmem [resolvable:$true] %s27_s10 }
   0x3   :  { %p1224_p1 = scmp.lt.u32.totalorder %s1220_s13, %s1484_s3 }
   0x5   :  { %p1226_p2 = pnand %p1224_p1, %p1221_p0 }
   0x7   :  { %1229 = shalt.err (!%p1226_p2)
}
   0x8   :  { %s1230_s18 = scalar_lea.vmem %s28_s10, 4096  ;;  %p1235_p4 = scmp.lt.s32.totalorder %s28_s10, %s28_s10 }
   0x9   :  { %p1231_p3 = scmp.ne.s32.totalorder %s28_s10, %s1230_s18  ;;  %p1236_p5 = scmp.lt.s32.totalorder %s1230_s18, %s1230_s18 }
   0xb   :  { %p1237_p6 = por %p1236_p5, %p1235_p4 }
   0xd   :  { %p1238_p7 = pnand %p1237_p6, %p1231_p3 }
   0xf   :  { %1241 = shalt.err (!%p1238_p7)
}
  0x10   :  { %s1269_s19 = smov 128   ;;  %s1270_s20 = smov 8  }
  0x11   :  { %33 = dma.hbm_to_vmem [thread:$0]  %s1484_s3, 4096, %s28_s10, [#allocation3], %s1269_s19, %s1269_s19, %s1270_s20  }
  0x12   :  { %s1271_s23 = smov [#allocation4]   ;;  %s1242_s27 = scalar_lea.hbm %s1486_s5, 4096 }
  0x13   :  { %s41_s24 = sshll.u32 %s1271_s23, 4  ;;  %p1243_p8 = scmp.ne.s32.totalorder %s1486_s5, %s1242_s27  ;;  %s42_s24 = int_to_ptr.vmem [resolvable:$true] %s41_s24 }
  0x14   :  { %p1246_p9 = scmp.lt.u32.totalorder %s1242_s27, %s1486_s5 }
  0x16   :  { %p1248_p10 = pnand %p1246_p9, %p1243_p8 }
  0x18   :  { %1251 = shalt.err (!%p1248_p10)
}
  0x19   :  { %s1252_s12 = scalar_lea.vmem %s42_s24, 4096  ;;  %p1257_p12 = scmp.lt.s32.totalorder %s42_s24, %s42_s24 }
  0x1a   :  { %p1253_p11 = scmp.ne.s32.totalorder %s42_s24, %s1252_s12  ;;  %p1258_p13 = scmp.lt.s32.totalorder %s1252_s12, %s1252_s12 }
  0x1c   :  { %p1259_p0 = por %p1258_p13, %p1257_p12 }
  0x1e   :  { %p1260_p1 = pnand %p1259_p0, %p1253_p11 }
  0x20   :  { %1263 = shalt.err (!%p1260_p1)
}
  0x21   :  { %47 = dma.hbm_to_vmem [thread:$0]  %s1486_s5, 4096, %s42_s24, [#allocation5], %s1269_s19, %s1269_s19, %s1270_s20  }
  0x22   :  { %1264 = dma.done.wait [#allocation3], 4096  }
  0x23   :  { %1265 = vsyncadd [#allocation3], 4294963200 }
  0x24   :  { %1266 = dma.done.wait [#allocation5], 4096  }
  0x25   :  { %1267 = vsyncadd [#allocation5], 4294963200  ;;  %v1272_v0 = vmov 0   ;;  %v1075_v1 = vld [vmem:[%s1482_s1 + $0x4] ss:$16 sps:$4 sm:$0xff]   ;;  %vm950_vm0 = vcmask 7168  }
  0x26   :  { %315 = vmatprep.mubr.bf16.mxu0 %v1272_v0  ;;  %358 = vmatprep.mubr.bf16.mxu1 %v1272_v0  ;;  %v1077_v2 = vld [vmem:[%s1482_s1 + $0xc] ss:$16 sps:$4 sm:$0xff]   ;;  %v1079_v3 = vld [vmem:[%s1482_s1] ss:$16 sps:$4 sm:$0xff]   ;;  %v1080_v4 = vld [vmem:[%s1482_s1 + $0x8] ss:$16 sps:$4 sm:$0xff]  }
  0x27   :  { %283 = vmatprep.subr.bf16.mxu0 %v1075_v1  ;;  %326 = vmatprep.subr.bf16.mxu1 %v1077_v2  ;;  %v1081_v5 = vld [vmem:[%s1482_s1 + $0x24] ss:$16 sps:$4 sm:$0xff]   ;;  %v1083_v6 = vld [vmem:[%s1482_s1 + $0x2c] ss:$16 sps:$4 sm:$0xff]   ;;  %v1085_v7 = vld [vmem:[%s1482_s1 + $0x20] ss:$16 sps:$4 sm:$0xff]  }
  0x28   :  { %284 = vmatpush1.bf16.msra.mxu0 %v1079_v3  ;;  %327 = vmatpush1.bf16.msra.mxu1 %v1080_v4  ;;  %v1086_v8 = vld [vmem:[%s1482_s1 + $0x28] ss:$16 sps:$4 sm:$0xff]   ;;  %v1087_v9 = vld [vmem:[%s1482_s1 + $0x44] ss:$16 sps:$4 sm:$0xff]   ;;  %v1089_v10 = vld [vmem:[%s1482_s1 + $0x4c] ss:$16 sps:$4 sm:$0xff]  }
  0x29   :  { %285 = vmatprep.subr.bf16.mxu0 %v1081_v5  ;;  %328 = vmatprep.subr.bf16.mxu1 %v1083_v6  ;;  %v1091_v11 = vld [vmem:[%s1482_s1 + $0x40] ss:$16 sps:$4 sm:$0xff]   ;;  %v1092_v12 = vld [vmem:[%s1482_s1 + $0x48] ss:$16 sps:$4 sm:$0xff]   ;;  %v1093_v13 = vld [vmem:[%s1482_s1 + $0x64] ss:$16 sps:$4 sm:$0xff]  }
  0x2a   :  { %v1095_v14 = vld [vmem:[%s1482_s1 + $0x6c] ss:$16 sps:$4 sm:$0xff]   ;;  %v1097_v15 = vld [vmem:[%s1482_s1 + $0x60] ss:$16 sps:$4 sm:$0xff]   ;;  %v1098_v16 = vld [vmem:[%s1482_s1 + $0x68] ss:$16 sps:$4 sm:$0xff]  }
  0x2b   :  { %v1099_v17 = vld [vmem:[%s1482_s1 + $0x84] ss:$16 sps:$4 sm:$0xff]   ;;  %v1101_v18 = vld [vmem:[%s1482_s1 + $0x8c] ss:$16 sps:$4 sm:$0xff]   ;;  %v1103_v19 = vld [vmem:[%s1482_s1 + $0x80] ss:$16 sps:$4 sm:$0xff]  }
  0x2c   :  { %286 = vmatpush1.bf16.msra.mxu0 %v1085_v7  ;;  %329 = vmatpush1.bf16.msra.mxu1 %v1086_v8  ;;  %v1104_v20 = vld [vmem:[%s1482_s1 + $0x88] ss:$16 sps:$4 sm:$0xff]   ;;  %v1105_v21 = vld [vmem:[%s1482_s1 + $0xa4] ss:$16 sps:$4 sm:$0xff]   ;;  %v1107_v22 = vld [vmem:[%s1482_s1 + $0xac] ss:$16 sps:$4 sm:$0xff]  }
  0x2d   :  { %287 = vmatprep.subr.bf16.mxu0 %v1087_v9  ;;  %330 = vmatprep.subr.bf16.mxu1 %v1089_v10  ;;  %v1109_v23 = vld [vmem:[%s1482_s1 + $0xa0] ss:$16 sps:$4 sm:$0xff]   ;;  %v1110_v24 = vld [vmem:[%s1482_s1 + $0xa8] ss:$16 sps:$4 sm:$0xff]   ;;  %v1111_v25 = vld [vmem:[%s1482_s1 + $0xc4] ss:$16 sps:$4 sm:$0xff]  }
  0x2e   :  { %v1113_v26 = vld [vmem:[%s1482_s1 + $0xcc] ss:$16 sps:$4 sm:$0xff]   ;;  %v1115_v27 = vld [vmem:[%s1482_s1 + $0xc0] ss:$16 sps:$4 sm:$0xff]   ;;  %v1116_v28 = vld [vmem:[%s1482_s1 + $0xc8] ss:$16 sps:$4 sm:$0xff]  }
  0x2f   :  { %v1117_v29 = vld [vmem:[%s1482_s1 + $0xe4] ss:$16 sps:$4 sm:$0xff]   ;;  %v1119_v30 = vld [vmem:[%s1482_s1 + $0xec] ss:$16 sps:$4 sm:$0xff]   ;;  %v1121_v31 = vld [vmem:[%s1482_s1 + $0xe0] ss:$16 sps:$4 sm:$0xff]  }
  0x30   :  { %288 = vmatpush1.bf16.msra.mxu0 %v1091_v11  ;;  %331 = vmatpush1.bf16.msra.mxu1 %v1092_v12  ;;  %v1122_v32 = vld [vmem:[%s1482_s1 + $0xe8] ss:$16 sps:$4 sm:$0xff]   ;;  %v1126_v33 = vld [vmem:[#allocation2 + $0x4] ss:$8 sps:$4 sm:$0xff]   ;;  %v1132_v38 = vld [vmem:[#allocation2 + $0x14] ss:$8 sps:$4 sm:$0xff]  }
  0x31   :  { %289 = vmatprep.subr.bf16.mxu0 %v1093_v13  ;;  %332 = vmatprep.subr.bf16.mxu1 %v1095_v14  ;;  %v1129_v34 = vld [vmem:[#allocation4 + $0x4] ss:$8 sps:$4 sm:$0xff]   ;;  %v1124_v36 = vld [vmem:[#allocation2] ss:$8 sps:$4 sm:$0xff]   ;;  %v1135_v39 = vld [vmem:[#allocation4 + $0x14] ss:$8 sps:$4 sm:$0xff]  }
  0x32   :  { %v1123_v35 = vld [vmem:[%s1481_s0] sm:$0xff]   ;;  %v1130_v40 = vld [vmem:[#allocation2 + $0x10] ss:$8 sps:$4 sm:$0xff]   ;;  %v1144_v46 = vld [vmem:[#allocation2 + $0x34] ss:$8 sps:$4 sm:$0xff]   ;;  %vm962_vm1 = vcmask 15368  }
  0x33   :  { %v1127_v37 = vld [vmem:[#allocation4] ss:$8 sps:$4 sm:$0xff]   ;;  %v1133_v41 = vld [vmem:[#allocation4 + $0x10] ss:$8 sps:$4 sm:$0xff]   ;;  %v1138_v42 = vld [vmem:[#allocation2 + $0x24] ss:$8 sps:$4 sm:$0xff]  }
  0x34   :  { %290 = vmatpush1.bf16.msra.mxu0 %v1097_v15  ;;  %333 = vmatpush1.bf16.msra.mxu1 %v1098_v16  ;;  %v1141_v43 = vld [vmem:[#allocation4 + $0x24] ss:$8 sps:$4 sm:$0xff]   ;;  %v1136_v44 = vld [vmem:[#allocation2 + $0x20] ss:$8 sps:$4 sm:$0xff]   ;;  %v1147_v47 = vld [vmem:[#allocation4 + $0x34] ss:$8 sps:$4 sm:$0xff]  }
  0x35   :  { %291 = vmatprep.subr.bf16.mxu0 %v1099_v17  ;;  %334 = vmatprep.subr.bf16.mxu1 %v1101_v18  ;;  %v1139_v45 = vld [vmem:[#allocation4 + $0x20] ss:$8 sps:$4 sm:$0xff]   ;;  %v1142_v48 = vld [vmem:[#allocation2 + $0x30] ss:$8 sps:$4 sm:$0xff]   ;;  %v1150_v50 = vld [vmem:[#allocation2 + $0x44] ss:$8 sps:$4 sm:$0xff]  }
  0x36   :  { %v1145_v49 = vld [vmem:[#allocation4 + $0x30] ss:$8 sps:$4 sm:$0xff]   ;;  %v1153_v51 = vld [vmem:[#allocation4 + $0x44] ss:$8 sps:$4 sm:$0xff]   ;;  %v1148_v52 = vld [vmem:[#allocation2 + $0x40] ss:$8 sps:$4 sm:$0xff]  }
  0x37   :  { %v1151_v53 = vld [vmem:[#allocation4 + $0x40] ss:$8 sps:$4 sm:$0xff]   ;;  %v1156_v54 = vld [vmem:[#allocation2 + $0x54] ss:$8 sps:$4 sm:$0xff]   ;;  %v1154_v56 = vld [vmem:[#allocation2 + $0x50] ss:$8 sps:$4 sm:$0xff]  }
  0x38   :  { %292 = vmatpush1.bf16.msra.mxu0 %v1103_v19  ;;  %335 = vmatpush1.bf16.msra.mxu1 %v1104_v20  ;;  %v1159_v55 = vld [vmem:[#allocation4 + $0x54] ss:$8 sps:$4 sm:$0xff]   ;;  %v1157_v57 = vld [vmem:[#allocation4 + $0x50] ss:$8 sps:$4 sm:$0xff]   ;;  %v1162_v58 = vld [vmem:[#allocation2 + $0x64] ss:$8 sps:$4 sm:$0xff]  }
  0x39   :  { %293 = vmatprep.subr.bf16.mxu0 %v1105_v21  ;;  %336 = vmatprep.subr.bf16.mxu1 %v1107_v22  ;;  %v1165_v59 = vld [vmem:[#allocation4 + $0x64] ss:$8 sps:$4 sm:$0xff]   ;;  %v1160_v60 = vld [vmem:[#allocation2 + $0x60] ss:$8 sps:$4 sm:$0xff]   ;;  %v1168_v62 = vld [vmem:[#allocation2 + $0x74] ss:$8 sps:$4 sm:$0xff]  }
  0x3a   :  { %v1163_v61 = vld [vmem:[#allocation4 + $0x60] ss:$8 sps:$4 sm:$0xff]   ;;  %v1171_v63 = vld [vmem:[#allocation4 + $0x74] ss:$8 sps:$4 sm:$0xff]   ;;  %v1166_v0 = vld [vmem:[#allocation2 + $0x70] ss:$8 sps:$4 sm:$0xff]  }
  0x3b   :  { %v1169_v1 = vld [vmem:[#allocation4 + $0x70] ss:$8 sps:$4 sm:$0xff]   ;;  %v1174_v2 = vld [vmem:[#allocation2 + $0x84] ss:$8 sps:$4 sm:$0xff]   ;;  %v1172_v4 = vld [vmem:[#allocation2 + $0x80] ss:$8 sps:$4 sm:$0xff]  }
  0x3c   :  { %294 = vmatpush1.bf16.msra.mxu0 %v1109_v23  ;;  %337 = vmatpush1.bf16.msra.mxu1 %v1110_v24  ;;  %v1177_v3 = vld [vmem:[#allocation4 + $0x84] ss:$8 sps:$4 sm:$0xff]   ;;  %v1175_v5 = vld [vmem:[#allocation4 + $0x80] ss:$8 sps:$4 sm:$0xff]   ;;  %v1180_v6 = vld [vmem:[#allocation2 + $0x94] ss:$8 sps:$4 sm:$0xff]  }
  0x3d   :  { %295 = vmatprep.subr.bf16.mxu0 %v1111_v25  ;;  %338 = vmatprep.subr.bf16.mxu1 %v1113_v26  ;;  %v1183_v7 = vld [vmem:[#allocation4 + $0x94] ss:$8 sps:$4 sm:$0xff]   ;;  %v1178_v8 = vld [vmem:[#allocation2 + $0x90] ss:$8 sps:$4 sm:$0xff]   ;;  %v1186_v10 = vld [vmem:[#allocation2 + $0xa4] ss:$8 sps:$4 sm:$0xff]  }
  0x3e   :  { %v1181_v9 = vld [vmem:[#allocation4 + $0x90] ss:$8 sps:$4 sm:$0xff]   ;;  %v1189_v11 = vld [vmem:[#allocation4 + $0xa4] ss:$8 sps:$4 sm:$0xff]   ;;  %v1184_v12 = vld [vmem:[#allocation2 + $0xa0] ss:$8 sps:$4 sm:$0xff]  }
  0x3f   :  { %v1187_v13 = vld [vmem:[#allocation4 + $0xa0] ss:$8 sps:$4 sm:$0xff]   ;;  %v1192_v14 = vld [vmem:[#allocation2 + $0xb4] ss:$8 sps:$4 sm:$0xff]   ;;  %v1190_v16 = vld [vmem:[#allocation2 + $0xb0] ss:$8 sps:$4 sm:$0xff]  }
  0x40   :  { %296 = vmatpush1.bf16.msra.mxu0 %v1115_v27  ;;  %339 = vmatpush1.bf16.msra.mxu1 %v1116_v28  ;;  %v1195_v15 = vld [vmem:[#allocation4 + $0xb4] ss:$8 sps:$4 sm:$0xff]   ;;  %v1193_v17 = vld [vmem:[#allocation4 + $0xb0] ss:$8 sps:$4 sm:$0xff]   ;;  %v1198_v18 = vld [vmem:[#allocation2 + $0xc4] ss:$8 sps:$4 sm:$0xff]  }
  0x41   :  { %297 = vmatprep.subr.bf16.mxu0 %v1117_v29  ;;  %340 = vmatprep.subr.bf16.mxu1 %v1119_v30  ;;  %v1201_v19 = vld [vmem:[#allocation4 + $0xc4] ss:$8 sps:$4 sm:$0xff]   ;;  %v1196_v20 = vld [vmem:[#allocation2 + $0xc0] ss:$8 sps:$4 sm:$0xff]   ;;  %v1204_v22 = vld [vmem:[#allocation2 + $0xd4] ss:$8 sps:$4 sm:$0xff]  }
  0x42   :  { %v1199_v21 = vld [vmem:[#allocation4 + $0xc0] ss:$8 sps:$4 sm:$0xff]   ;;  %v1207_v23 = vld [vmem:[#allocation4 + $0xd4] ss:$8 sps:$4 sm:$0xff]   ;;  %v1202_v24 = vld [vmem:[#allocation2 + $0xd0] ss:$8 sps:$4 sm:$0xff]  }
  0x43   :  { %v1205_v25 = vld [vmem:[#allocation4 + $0xd0] ss:$8 sps:$4 sm:$0xff]   ;;  %v1210_v26 = vld [vmem:[#allocation2 + $0xe4] ss:$8 sps:$4 sm:$0xff]   ;;  %v1208_v28 = vld [vmem:[#allocation2 + $0xe0] ss:$8 sps:$4 sm:$0xff]  }
  0x44   :  { %298 = vmatpush1.bf16.msra.mxu0 %v1121_v31  ;;  %341 = vmatpush1.bf16.msra.mxu1 %v1122_v32  ;;  %v1213_v27 = vld [vmem:[#allocation4 + $0xe4] ss:$8 sps:$4 sm:$0xff]   ;;  %v1211_v29 = vld [vmem:[#allocation4 + $0xe0] ss:$8 sps:$4 sm:$0xff]   ;;  %v1216_v30 = vld [vmem:[#allocation2 + $0xf4] ss:$8 sps:$4 sm:$0xff]  }
  0x45   :  { %585 = vmatprep.subr.bf16.mxu0 %v1126_v33  ;;  %836 = vmatprep.subr.bf16.mxu1 %v1129_v34  ;;  %v1219_v31 = vld [vmem:[#allocation4 + $0xf4] ss:$8 sps:$4 sm:$0xff]   ;;  %v1214_v32 = vld [vmem:[#allocation2 + $0xf0] ss:$8 sps:$4 sm:$0xff]   ;;  %v97_v34 = vlaneseq }
  0x46   :  { %v1217_v33 = vld [vmem:[#allocation4 + $0xf0] ss:$8 sps:$4 sm:$0xff]  }
  0x47   :  { %316 = vmatmul.mubr.bf16.vlgmr.msra.gmra.mrb[0].mxu0 %v1123_v35  ;;  %359 = vmatmul.mubr.bf16.vlgmr.msra.gmra.mrb[0].mxu1 %v1123_v35  ;;  %v98_v35 = vshrl.u32 %v97_v34, 7 }
  0x48   :  { %586 = vmatpush1.bf16.msra.mxu0 %v1124_v36  ;;  %837 = vmatpush1.bf16.msra.mxu1 %v1127_v37 }
  0x49   :  { %587 = vmatprep.subr.bf16.mxu0 %v1132_v38  ;;  %838 = vmatprep.subr.bf16.mxu1 %v1135_v39  ;;  %v1446_v36 = vsub.s32 0, %v98_v35  ;;  %v107_v37 = vsub.s32 2, %v98_v35  ;;  %v95_v38 = vld [vmem:[%s1483_s2] sm:$0xf]  ;;  %v103_v39 = vsub.s32 1, %v98_v35 }
  0x4c   :  { %588 = vmatpush1.bf16.msra.mxu0 %v1130_v40  ;;  %839 = vmatpush1.bf16.msra.mxu1 %v1133_v41  ;;  %v111_v40 = vsub.s32 3, %v98_v35  ;;  %v100_v41 = vrot.slane %v95_v38, %v1446_v36 }
  0x4d   :  { %589 = vmatprep.subr.bf16.mxu0 %v1138_v42  ;;  %840 = vmatprep.subr.bf16.mxu1 %v1141_v43  ;;  %v108_v42 = vrot.slane %v95_v38, %v107_v37  ;;  %v104_v43 = vrot.slane %v95_v38, %v103_v39 }
  0x50   :  { %590 = vmatpush1.bf16.msra.mxu0 %v1136_v44  ;;  %841 = vmatpush1.bf16.msra.mxu1 %v1139_v45  ;;  %v112_v44 = vrot.slane %v95_v38, %v111_v40 }
  0x51   :  { %591 = vmatprep.subr.bf16.mxu0 %v1144_v46  ;;  %842 = vmatprep.subr.bf16.mxu1 %v1147_v47 }
  0x54   :  { %592 = vmatpush1.bf16.msra.mxu0 %v1142_v48  ;;  %843 = vmatpush1.bf16.msra.mxu1 %v1145_v49 }
  0x55   :  { %593 = vmatprep.subr.bf16.mxu0 %v1150_v50  ;;  %844 = vmatprep.subr.bf16.mxu1 %v1153_v51 }
  0x58   :  { %594 = vmatpush1.bf16.msra.mxu0 %v1148_v52  ;;  %845 = vmatpush1.bf16.msra.mxu1 %v1151_v53 }
  0x59   :  { %595 = vmatprep.subr.bf16.mxu0 %v1156_v54  ;;  %846 = vmatprep.subr.bf16.mxu1 %v1159_v55 }
  0x5c   :  { %596 = vmatpush1.bf16.msra.mxu0 %v1154_v56  ;;  %847 = vmatpush1.bf16.msra.mxu1 %v1157_v57 }
  0x5d   :  { %597 = vmatprep.subr.bf16.mxu0 %v1162_v58  ;;  %848 = vmatprep.subr.bf16.mxu1 %v1165_v59 }
  0x60   :  { %598 = vmatpush1.bf16.msra.mxu0 %v1160_v60  ;;  %849 = vmatpush1.bf16.msra.mxu1 %v1163_v61 }
  0x61   :  { %599 = vmatprep.subr.bf16.mxu0 %v1168_v62  ;;  %850 = vmatprep.subr.bf16.mxu1 %v1171_v63 }
  0x64   :  { %600 = vmatpush1.bf16.msra.mxu0 %v1166_v0  ;;  %851 = vmatpush1.bf16.msra.mxu1 %v1169_v1 }
  0x65   :  { %601 = vmatprep.subr.bf16.mxu0 %v1174_v2  ;;  %852 = vmatprep.subr.bf16.mxu1 %v1177_v3 }
  0x68   :  { %602 = vmatpush1.bf16.msra.mxu0 %v1172_v4  ;;  %853 = vmatpush1.bf16.msra.mxu1 %v1175_v5 }
  0x69   :  { %603 = vmatprep.subr.bf16.mxu0 %v1180_v6  ;;  %854 = vmatprep.subr.bf16.mxu1 %v1183_v7 }
  0x6c   :  { %604 = vmatpush1.bf16.msra.mxu0 %v1178_v8  ;;  %855 = vmatpush1.bf16.msra.mxu1 %v1181_v9  ;;  %v883_v9 = vld [vmem:[%s1488_s7] sm:$0xf] }
  0x6d   :  { %605 = vmatprep.subr.bf16.mxu0 %v1186_v10  ;;  %856 = vmatprep.subr.bf16.mxu1 %v1189_v11  ;;  %v413_v10 = vld [vmem:[%s1485_s4] sm:$0x3] }
  0x6e   :  { %v664_v11 = vld [vmem:[%s1487_s6] sm:$0x3] }
  0x70   :  { %606 = vmatpush1.bf16.msra.mxu0 %v1184_v12  ;;  %857 = vmatpush1.bf16.msra.mxu1 %v1187_v13  ;;  %v418_v12 = vrot.slane %v413_v10, %v1446_v36  ;;  %v669_v13 = vrot.slane %v664_v11, %v1446_v36 }
  0x71   :  { %607 = vmatprep.subr.bf16.mxu0 %v1192_v14  ;;  %858 = vmatprep.subr.bf16.mxu1 %v1195_v15  ;;  %v888_v14 = vrot.slane %v883_v9, %v1446_v36  ;;  %v916_v15 = vrot.slane %v883_v9, %v103_v39 }
  0x74   :  { %608 = vmatpush1.bf16.msra.mxu0 %v1190_v16  ;;  %859 = vmatpush1.bf16.msra.mxu1 %v1193_v17  ;;  %v892_v16 = vrot.slane %v883_v9, %v107_v37  ;;  %v920_v17 = vrot.slane %v883_v9, %v111_v40 }
  0x75   :  { %609 = vmatprep.subr.bf16.mxu0 %v1198_v18  ;;  %860 = vmatprep.subr.bf16.mxu1 %v1201_v19  ;;  %v422_v18 = vrot.slane %v413_v10, %v103_v39  ;;  %v673_v19 = vrot.slane %v664_v11, %v103_v39 }
  0x78   :  { %610 = vmatpush1.bf16.msra.mxu0 %v1196_v20  ;;  %861 = vmatpush1.bf16.msra.mxu1 %v1199_v21 }
  0x79   :  { %611 = vmatprep.subr.bf16.mxu0 %v1204_v22  ;;  %862 = vmatprep.subr.bf16.mxu1 %v1207_v23 }
  0x7c   :  { %612 = vmatpush1.bf16.msra.mxu0 %v1202_v24  ;;  %863 = vmatpush1.bf16.msra.mxu1 %v1205_v25 }
  0x7d   :  { %613 = vmatprep.subr.bf16.mxu0 %v1210_v26  ;;  %864 = vmatprep.subr.bf16.mxu1 %v1213_v27  ;;  %v898_v26 = vrot.slane %v888_v14, %v1446_v36  ;;  %v926_v27 = vrot.slane %v916_v15, %v103_v39 }
  0x80   :  { %614 = vmatpush1.bf16.msra.mxu0 %v1208_v28  ;;  %865 = vmatpush1.bf16.msra.mxu1 %v1211_v29 }
  0x81   :  { %615 = vmatprep.subr.bf16.mxu0 %v1216_v30  ;;  %866 = vmatprep.subr.bf16.mxu1 %v1219_v31 }
  0x84   :  { %616 = vmatpush1.bf16.msra.mxu0 %v1214_v32  ;;  %867 = vmatpush1.bf16.msra.mxu1 %v1217_v33  ;;  %v902_v32 = vrot.slane %v892_v16, %v1446_v36  ;;  %v930_v33 = vrot.slane %v920_v17, %v103_v39 }
 0x11a   :  { %v317_v45 = vpop.f32.mrb[0].mxu0  ;;  %v360_v46 = vpop.f32.mrb[0].mxu1 }
 0x11b   :  { %v318_v47 = vadd.f32 %v317_v45, %v100_v41  ;;  %v361_v48 = vadd.f32 %v360_v46, %v108_v42  ;;  %v319_v49 = vpop.f32.mrb[1].mxu0  ;;  %v362_v50 = vpop.f32.mrb[1].mxu1 }
 0x11c   :  { %v320_v51 = vadd.f32 %v319_v49, %v104_v43  ;;  %v363_v52 = vadd.f32 %v362_v50, %v112_v44  ;;  %v321_v53 = vpop.f32.mrb[2].mxu0  ;;  %v364_v54 = vpop.f32.mrb[2].mxu1 }
 0x11d   :  { %v371_v55 = vmax.f32 %v361_v48, 0.0  ;;  %v322_v56 = vadd.f32 %v321_v53, %v100_v41  ;;  %v365_v57 = vadd.f32 %v364_v54, %v108_v42  ;;  %v323_v58 = vpop.f32.mrb[3].mxu0  ;;  %v366_v59 = vpop.f32.mrb[3].mxu1  ;;  %v369_v62 = vmax.f32 %v318_v47, 0.0 }
 0x11e   :  { %v324_v60 = vadd.f32 %v323_v58, %v104_v43  ;;  %v367_v61 = vadd.f32 %v366_v59, %v112_v44  ;;  %v370_v1 = vmax.f32 %v320_v51, 0.0  ;;  %v372_v2 = vmax.f32 %v363_v52, 0.0 }
 0x11f   :  { %v373_v63 = vmax.f32 %v322_v56, 0.0  ;;  %v375_v0 = vmax.f32 %v365_v57, 0.0 }
 0x120   :  { %v374_v3 = vmax.f32 %v324_v60, 0.0  ;;  %v376_v4 = vmax.f32 %v367_v61, 0.0  ;;  %v1069_v60 = vld [vmem:[%s1489_s8] ss:$0 sm:$0xff] }
 0x121   :  { %v377_v5 = vpack.c.bf16 %v373_v63, %v369_v62  ;;  %v379_v6 = vpack.c.bf16 %v375_v0, %v371_v55 }
 0x122   :  { %v378_v7 = vpack.c.bf16 %v374_v3, %v370_v1  ;;  %v380_v8 = vpack.c.bf16 %v376_v4, %v372_v2 }
 0x124   :  { %617 = vmatprep.mubr.bf16.mxu0 %v378_v7  ;;  %868 = vmatprep.mubr.bf16.mxu1 %v380_v8 }
 0x125   :  { %618 = vmatmul.mubr.bf16.vlgmr.msra.gmra.mrb[4].mxu0 %v377_v5  ;;  %869 = vmatmul.mubr.bf16.vlgmr.msra.gmra.mrb[4].mxu1 %v379_v6 }
 0x1f8   :  { %v619_v20 = vpop.f32.mrb[4].mxu0  ;;  %v870_v21 = vpop.f32.mrb[4].mxu1 }
 0x1f9   :  { %v620_v22 = vadd.f32 %v619_v20, %v418_v12  ;;  %v871_v23 = vadd.f32 %v870_v21, %v669_v13  ;;  %v621_v24 = vpop.f32.mrb[5].mxu0  ;;  %v872_v25 = vpop.f32.mrb[5].mxu1 }
 0x1fa   :  { %v622_v28 = vadd.f32 %v621_v24, %v422_v18  ;;  %v873_v29 = vadd.f32 %v872_v25, %v673_v19  ;;  %v623_v30 = vpop.f32.mrb[6].mxu0  ;;  %v874_v31 = vpop.f32.mrb[6].mxu1 }
 0x1fb   :  { %v628_v34 = vmax.f32 %v620_v22, 0.0  ;;  %v879_v35 = vmax.f32 %v871_v23, 0.0  ;;  %v624_v37 = vadd.f32 %v623_v30, %v418_v12  ;;  %v875_v38 = vadd.f32 %v874_v31, %v669_v13  ;;  %v625_v40 = vpop.f32.mrb[7].mxu0  ;;  %v876_v41 = vpop.f32.mrb[7].mxu1 }
 0x1fc   :  { %v629_v42 = vmax.f32 %v622_v28, 0.0  ;;  %v880_v43 = vmax.f32 %v873_v29, 0.0  ;;  %v626_v44 = vadd.f32 %v625_v40, %v422_v18  ;;  %v877_v45 = vadd.f32 %v876_v41, %v673_v19 }
 0x1fd   :  { %v630_v46 = vmax.f32 %v624_v37, 0.0  ;;  %v881_v47 = vmax.f32 %v875_v38, 0.0  ;;  %v931_v48 = vmul.f32 %v926_v27, %v879_v35  ;;  %v903_v49 = vmul.f32 %v898_v26, %v628_v34 }
 0x1fe   :  { %v631_v50 = vmax.f32 %v626_v44, 0.0  ;;  %v882_v51 = vmax.f32 %v877_v45, 0.0  ;;  %v932_v52 = vmul.f32 %v930_v33, %v880_v43  ;;  %v904_v53 = vmul.f32 %v902_v32, %v629_v42 }
 0x1ff   :  { %v905_v36 = vmul.f32 %v898_v26, %v630_v46  ;;  %v933_v39 = vmul.f32 %v926_v27, %v881_v47 }
 0x200   :  { %v906_v54 = vmul.f32 %v902_v32, %v631_v50  ;;  %v934_v55 = vmul.f32 %v930_v33, %v882_v51  ;;  %v935_v56 = vadd.f32 %v932_v52, %v931_v48  ;;  %v907_v57 = vadd.f32 %v904_v53, %v903_v49 }
 0x202   :  { %936 = vadd.xlane.f32.xlu1 %v935_v56  ;;  %908 = vadd.xlane.f32.xlu0 %v907_v57  ;;  %v938_v58 = vadd.f32 %v934_v55, %v933_v39  ;;  %v910_v59 = vadd.f32 %v906_v54, %v905_v36 }
 0x206   :  { %939 = vadd.xlane.f32.xlu1 %v938_v58  ;;  %911 = vadd.xlane.f32.xlu0 %v910_v59 }
 0x28f   :  { %v937_v61 = vpop.xlane.xlu1 %936  ;;  %v909_v62 = vpop.xlane.xlu0 %908 }
 0x290   :  { %v960_v63 = vadd.f32 %v1069_v60, %v937_v61  ;;  %v948_v0 = vadd.f32 %v1069_v60, %v909_v62 }
 0x292   :  { %951 = vst.msk [vmem:[%s1490_s9] sm:$0xff] %vm950_vm0, %v948_v0 }
 0x293   :  { %963 = vst.msk [vmem:[%s1490_s9] sm:$0xff] %vm962_vm1, %v960_v63  ;;  %v940_v1 = vpop.xlane.xlu1 %939  ;;  %v912_v2 = vpop.xlane.xlu0 %911 }
 0x294   :  { %v961_v3 = vadd.f32 %v1069_v60, %v940_v1  ;;  %v949_v4 = vadd.f32 %v1069_v60, %v912_v2 }
 0x296   :  { %952 = vst.msk [vmem:[%s1490_s9 + $0x8] sm:$0xff] %vm950_vm0, %v949_v4 }
 0x297   :  { %964 = vst.msk [vmem:[%s1490_s9 + $0x8] sm:$0xff] %vm962_vm1, %v961_v3 }
 0x298   :  { %969 = vsyncpa [#allocation3], 1 }
 0x299   :  { %970 = vsyncpa [#allocation5], 1 }

</bundles_post_ra>
